<compile_context>
chip_gen: v7x
topology: tpu7x:2x2x1
jax: 0.10.0
libtpu: 0.0.40
codegen_flags: <defaults>
</compile_context>

<pallas_src>
import jax
import jax.numpy as jnp
from jax.experimental import pallas as pl
from jax.experimental.pallas import tpu as pltpu

BN_EPS = 1e-5


# ------------------------------ small helpers --------------------------------

def _round_up(n, m):
    return ((n + m - 1) // m) * m


def _largest_divisor_leq(n, target, multiple_of=1):
    # Largest divisor of n that is <= target (preferring multiples of
    # `multiple_of`).  Keeps grids exact without ragged-chunk handling.
    target = max(1, min(n, target))
    best = 1
    for d in range(1, target + 1):
        if n % d == 0 and d % multiple_of == 0:
            best = d
    if best == 1 and multiple_of > 1:
        for d in range(1, target + 1):
            if n % d == 0:
                best = d
    return best


def _vmem_limit_bytes():
    # Derive the scoped-VMEM cap per chip generation (review: ~54 MiB on v7x's
    # 64 MiB, ~108 MiB on v5e/v6e's 128 MiB), leaving headroom for compiler
    # scratch and the pipeline's double buffers.
    cap = None
    try:
        info = pltpu.get_tpu_info()
        cap = getattr(info, "vmem_capacity_bytes", None)
    except Exception:
        cap = None
    if not cap:
        cap = 64 * 1024 * 1024
    return int(cap * 0.85)


# ------------------------------- Pallas kernels -------------------------------

def bn_relu_proj_kernel(x_ref, scale_ref, shift_ref, wih_ref, bih_ref, gi_ref):
    # x_ref: (TM, D) f32 rows (time-major, batch padded to Bp).
    # scale/shift: (1, D) f32 precomputed BN scale/shift (training-mode stats).
    # wih_ref: (D, 6Hp) bf16  [W_ih_fwd | W_ih_bwd], gate-lane padded.
    # bih_ref: (1, 6Hp) f32   [b_ih_fwd | b_ih_bwd].
    # gi_ref: (TM, 6Hp) bf16 output.
    xh = jnp.maximum(x_ref[...] * scale_ref[...] + shift_ref[...], 0.0)
    acc = jnp.dot(xh.astype(jnp.bfloat16), wih_ref[...],
                  preferred_element_type=jnp.float32)
    gi_ref[...] = (acc + bih_ref[...]).astype(gi_ref.dtype)


def bigru_kernel(gi_ref, whh_ref, bhh_ref, out_ref, h_ref):
    # Grid = (direction, time_chunk); per program:
    #   gi_ref:  (TC, Bp, 3Hp) bf16  time-ascending gi for THIS direction
    #            (backward direction was pre-reversed in the wrapper).
    #   whh_ref: (Hp, 3Hp) bf16      this direction's hidden weights (padded).
    #   bhh_ref: (1, 3Hp) f32        this direction's hidden bias.
    #   out_ref: (TC, Bp, Hp) f32    this direction's hidden states.
    #   h_ref:   (Bp, Hp) f32        persistent scratch carry across chunks.
    tc, bp, three_hp = gi_ref.shape
    hp = three_hp // 3

    @pl.when(pl.program_id(1) == 0)
    def _init():
        h_ref[...] = jnp.zeros_like(h_ref)

    whh = whh_ref[...]                                   # hoisted weight load
    bhh = jnp.broadcast_to(bhh_ref[...], (bp, three_hp))  # hoisted broadcast

    def sigmoid(x):
        # 0.5*(tanh(0.5x)+1): one EUP push instead of exp + reciprocal.
        return 0.5 * jnp.tanh(0.5 * x) + 0.5

    def step(t, h):                                      # h: (Bp, Hp) f32
        gh = jnp.dot(h.astype(jnp.bfloat16), whh,
                     preferred_element_type=jnp.float32) + bhh
        gi = gi_ref[t].astype(jnp.float32)
        # Gate slices are lane-aligned because Hp is a multiple of 128.
        r = sigmoid(gi[:, :hp] + gh[:, :hp])
        z = sigmoid(gi[:, hp:2 * hp] + gh[:, hp:2 * hp])
        n = jnp.tanh(gi[:, 2 * hp:] + r * gh[:, 2 * hp:])
        h_new = n + z * (h - n)                          # == (1-z)*n + z*h
        out_ref[t] = h_new                               # lane-dense full-row store
        return h_new

    h_ref[...] = jax.lax.fori_loop(0, tc, step, h_ref[...], unroll=2)


# -------------------------------- JAX wrapper ---------------------------------

def bn_relu_rnn_forward(inputs, input_lengths, params, *,
                        time_chunk=128, row_tile=1024):
    # input_lengths is unused, mirroring the PyTorch forward.
    # TODO(synk): input_lengths is ignored (as in the PyTorch module), so padded
    # frames feed both the BN statistics and the recurrence.
    del input_lengths
    B, T, D = inputs.shape
    H = params['whh_f'].shape[0]
    Bp = _round_up(B, 8)        # sublane-aligned batch
    Hp = _round_up(H, 128)      # lane-aligned gate slabs
    f32, bf16 = jnp.float32, jnp.bfloat16

    # ---- training-mode BatchNorm stats folded into per-feature scale/shift ----
    x_in = inputs.astype(f32)
    mean = jnp.mean(x_in, axis=(0, 1))
    var = jnp.mean(jnp.square(x_in - mean), axis=(0, 1))     # biased variance
    scale_v = params['gamma'] * jax.lax.rsqrt(var + BN_EPS)
    shift_v = params['beta'] - mean * scale_v
    scale = scale_v.reshape(1, D).astype(f32)
    shift = shift_v.reshape(1, D).astype(f32)

    # ---- pad gate lanes (H -> Hp) and pack per-direction weights ----
    def pad_gate_cols(w):
        out = jnp.zeros(w.shape[:-1] + (3 * Hp,), f32)
        for k in range(3):
            out = out.at[..., k * Hp:k * Hp + H].set(
                w.astype(f32)[..., k * H:(k + 1) * H])
        return out

    wih_f, wih_b = pad_gate_cols(params['wih_f']), pad_gate_cols(params['wih_b'])
    bih_f, bih_b = pad_gate_cols(params['bih_f']), pad_gate_cols(params['bih_b'])
    whh_f = jnp.zeros((Hp, 3 * Hp), f32).at[:H].set(pad_gate_cols(params['whh_f']))
    whh_b = jnp.zeros((Hp, 3 * Hp), f32).at[:H].set(pad_gate_cols(params['whh_b']))
    bhh_f, bhh_b = pad_gate_cols(params['bhh_f']), pad_gate_cols(params['bhh_b'])

    wih_cat = jnp.concatenate([wih_f, wih_b], axis=1).astype(bf16)   # (D, 6Hp)
    bih_cat = jnp.concatenate([bih_f, bih_b], axis=1).astype(f32)    # (1, 6Hp)
    whh_stack = jnp.stack([whh_f, whh_b], axis=0).astype(bf16)       # (2, Hp, 3Hp)
    bhh_stack = jnp.stack([bhh_f, bhh_b], axis=0).astype(f32)        # (2, 1, 3Hp)

    # ---- time-major rows, batch padded to Bp ----
    x = x_in
    if Bp != B:
        x = jnp.concatenate([x, jnp.zeros((Bp - B, T, D), f32)], axis=0)
    x_rows = jnp.transpose(x, (1, 0, 2)).reshape(T * Bp, D)

    vmem_limit = _vmem_limit_bytes()

    # ---- Kernel 1: row-tiled BN + ReLU + input projection (both directions) ----
    rows = T * Bp
    TM = _largest_divisor_leq(rows, row_tile, multiple_of=8)
    cost1 = pl.CostEstimate(
        flops=2 * rows * D * 6 * Hp,
        transcendentals=0,
        bytes_accessed=4 * rows * D + 2 * rows * 6 * Hp + 2 * D * 6 * Hp
                       + 4 * 6 * Hp + 8 * D)
    gi = pl.pallas_call(
        bn_relu_proj_kernel,
        out_shape=jax.ShapeDtypeStruct((rows, 6 * Hp), bf16),
        grid_spec=pltpu.PrefetchScalarGridSpec(
            num_scalar_prefetch=0,
            grid=(rows // TM,),
            in_specs=[
                pl.BlockSpec((TM, D), lambda i: (i, 0)),
                pl.BlockSpec((1, D), lambda i: (0, 0)),
                pl.BlockSpec((1, D), lambda i: (0, 0)),
                pl.BlockSpec((D, 6 * Hp), lambda i: (0, 0)),
                pl.BlockSpec((1, 6 * Hp), lambda i: (0, 0)),
            ],
            out_specs=pl.BlockSpec((TM, 6 * Hp), lambda i: (i, 0)),
        ),
        compiler_params=pltpu.CompilerParams(
            dimension_semantics=("parallel",),
            vmem_limit_bytes=vmem_limit),
        cost_estimate=cost1,
    )(x_rows, scale, shift, wih_cat, bih_cat)

    # ---- rearrange gi: per-direction, backward pre-reversed in time ----
    # TODO(synk): fuse this reversal/stack into kernel 1's output index_map to
    # avoid the extra HBM copy of gi.
    gi_t = gi.reshape(T, Bp, 6 * Hp)
    gi_stack = jnp.stack([gi_t[:, :, :3 * Hp],
                          gi_t[::-1, :, 3 * Hp:]], axis=0)   # (2, T, Bp, 3Hp)

    # ---- Kernel 2: time-chunk streamed bidirectional recurrence ----
    # TODO(synk): time chunks must divide T (wrapper picks a divisor); pad/mask
    # a ragged final chunk to support arbitrary T with large prime factors.
    TC = _largest_divisor_leq(T, time_chunk)
    NT = T // TC
    cost2 = pl.CostEstimate(
        flops=2 * 2 * T * Bp * Hp * 3 * Hp,
        transcendentals=2 * T * Bp * 3 * Hp,
        bytes_accessed=2 * gi_stack.size + 4 * 2 * T * Bp * Hp
                       + 2 * whh_stack.size + 4 * bhh_stack.size)
    out_stack = pl.pallas_call(
        bigru_kernel,
        out_shape=jax.ShapeDtypeStruct((2, T, Bp, Hp), f32),
        grid_spec=pltpu.PrefetchScalarGridSpec(
            num_scalar_prefetch=0,
            grid=(2, NT),
            in_specs=[
                pl.BlockSpec((pl.Squeezed(), TC, Bp, 3 * Hp),
                             lambda d, t: (d, t, 0, 0)),
                pl.BlockSpec((pl.Squeezed(), Hp, 3 * Hp),
                             lambda d, t: (d, 0, 0)),
                pl.BlockSpec((pl.Squeezed(), 1, 3 * Hp),
                             lambda d, t: (d, 0, 0)),
            ],
            out_specs=pl.BlockSpec((pl.Squeezed(), TC, Bp, Hp),
                                   lambda d, t: (d, t, 0, 0)),
            scratch_shapes=[pltpu.VMEM((Bp, Hp), f32)],
        ),
        compiler_params=pltpu.CompilerParams(
            dimension_semantics=("parallel", "arbitrary"),
            vmem_limit_bytes=vmem_limit),
        cost_estimate=cost2,
    )(gi_stack, whh_stack, bhh_stack)

    out_f = out_stack[0]              # (T, Bp, Hp) forward, ascending time
    out_b = out_stack[1][::-1]        # (T, Bp, Hp) backward, un-reversed
    out = jnp.concatenate([out_f[:, :B, :H], out_b[:, :B, :H]], axis=-1)
    return jnp.transpose(out, (1, 0, 2))   # (B, T, 2H)


# ----------------------------- pure-JAX reference -----------------------------
# Mirrors the kernel's numerics (bf16 MXU operands with f32 accumulation and a
# bf16-stored input projection) so a tight tolerance remains meaningful.

def _bf16_dot(a, b):
    return jnp.dot(a.astype(jnp.bfloat16), b.astype(jnp.bfloat16),
                   preferred_element_type=jnp.float32)


def _gru_dir_ref(xh, wih, whh, bih, bhh, reverse):
    B = xh.shape[0]
    H = whh.shape[0]
    gi_all = (_bf16_dot(xh, wih) + bih).astype(jnp.bfloat16).astype(jnp.float32)

    def step(h, gi):
        gh = _bf16_dot(h, whh) + bhh
        r = jax.nn.sigmoid(gi[:, :H] + gh[:, :H])
        z = jax.nn.sigmoid(gi[:, H:2 * H] + gh[:, H:2 * H])
        n = jnp.tanh(gi[:, 2 * H:] + r * gh[:, 2 * H:])
        h = (1.0 - z) * n + z * h
        return h, h

    gis = jnp.transpose(gi_all, (1, 0, 2))
    if reverse:
        gis = gis[::-1]
    _, ys = jax.lax.scan(step, jnp.zeros((B, H), jnp.float32), gis)
    if reverse:
        ys = ys[::-1]
    return jnp.transpose(ys, (1, 0, 2))


def forward_ref(inputs, params):
    mean = jnp.mean(inputs, axis=(0, 1))
    var = jnp.mean(jnp.square(inputs - mean), axis=(0, 1))
    scale_v = params['gamma'] * jax.lax.rsqrt(var + BN_EPS)
    shift_v = params['beta'] - mean * scale_v
    xh = jnp.maximum(inputs * scale_v + shift_v, 0.0)
    of = _gru_dir_ref(xh, params['wih_f'], params['whh_f'],
                      params['bih_f'], params['bhh_f'], reverse=False)
    ob = _gru_dir_ref(xh, params['wih_b'], params['whh_b'],
                      params['bih_b'], params['bhh_b'], reverse=True)
    return jnp.concatenate([of, ob], axis=-1)


# ------------------------------------ main -------------------------------------

if __name__ == "__main__":
    B, T, D, H = 2, 8, 16, 32   # batch, time, input_size, hidden_state_dim
    key = jax.random.PRNGKey(0)
    ks = jax.random.split(key, 10)

    inputs = jax.random.normal(ks[0], (B, T, D), jnp.float32)
    input_lengths = jnp.full((B,), T, dtype=jnp.int32)

    init_scale = 1.0 / float(H) ** 0.5
    u = lambda k, s: jax.random.uniform(k, s, jnp.float32, -init_scale, init_scale)

    params = {
        # BatchNorm1d(D) affine params (PyTorch init: gamma=1, beta=0)
        'gamma': jnp.ones((D,), jnp.float32),
        'beta': jnp.zeros((D,), jnp.float32),
        # GRU forward direction (weights stored transposed: x @ W)
        'wih_f': u(ks[1], (D, 3 * H)),
        'whh_f': u(ks[2], (H, 3 * H)),
        'bih_f': u(ks[3], (1, 3 * H)),
        'bhh_f': u(ks[4], (1, 3 * H)),
        # GRU backward direction
        'wih_b': u(ks[5], (D, 3 * H)),
        'whh_b': u(ks[6], (H, 3 * H)),
        'bih_b': u(ks[7], (1, 3 * H)),
        'bhh_b': u(ks[8], (1, 3 * H)),
    }

    # Small chunk/tile targets so the demo exercises multi-step grids.
    out = bn_relu_rnn_forward(inputs, input_lengths, params,
                              time_chunk=4, row_tile=32)
    out = jax.block_until_ready(out)

    ref = forward_ref(inputs, params)
    assert out.shape == (B, T, 2 * H), out.shape
    err = float(jnp.max(jnp.abs(out - ref)))
    assert err < 1e-3, err
    print("KERNEL_OK")
</pallas_src>

<mosaic_0001>
module attributes {stable_mosaic.version = 11 : i64} {
  func.func @bn_relu_proj_kernel(%arg0: i32, %arg1: memref<32x16xf32, #tpu.memory_space<vmem>>, %arg2: memref<1x16xf32, #tpu.memory_space<vmem>>, %arg3: memref<1x16xf32, #tpu.memory_space<vmem>>, %arg4: memref<16x768xbf16, #tpu.memory_space<vmem>>, %arg5: memref<1x768xf32, #tpu.memory_space<vmem>>, %arg6: memref<32x768xbf16, #tpu.memory_space<vmem>>) attributes {dimension_semantics = [#tpu.dimension_semantics<parallel>], iteration_bounds = array<i64: 2>, scalar_prefetch = 0 : i64, scratch_operands = 0 : i64, tpu.core_type = #tpu.core_type<tc>, window_params = [{transform_indices = @transform_0, window_bounds = array<i64: 32, 16>}, {pipeline_mode = #tpu.pipeline_mode<synchronous>, transform_indices = @transform_1, window_bounds = array<i64: 1, 16>}, {pipeline_mode = #tpu.pipeline_mode<synchronous>, transform_indices = @transform_2, window_bounds = array<i64: 1, 16>}, {pipeline_mode = #tpu.pipeline_mode<synchronous>, transform_indices = @transform_3, window_bounds = array<i64: 16, 768>}, {pipeline_mode = #tpu.pipeline_mode<synchronous>, transform_indices = @transform_4, window_bounds = array<i64: 1, 768>}, {transform_indices = @transform_5, window_bounds = array<i64: 32, 768>}]} {
    %c0 = arith.constant 0 : index
    %c0_0 = arith.constant 0 : index
    %0 = vector.load %arg1[%c0, %c0_0] : memref<32x16xf32, #tpu.memory_space<vmem>>, vector<32x16xf32>
    %c0_1 = arith.constant 0 : index
    %c0_2 = arith.constant 0 : index
    %1 = vector.load %arg2[%c0_1, %c0_2] : memref<1x16xf32, #tpu.memory_space<vmem>>, vector<1x16xf32>
    %2 = vector.broadcast %1 : vector<1x16xf32> to vector<32x16xf32>
    %3 = arith.mulf %0, %2 : vector<32x16xf32>
    %c0_3 = arith.constant 0 : index
    %c0_4 = arith.constant 0 : index
    %4 = vector.load %arg3[%c0_3, %c0_4] : memref<1x16xf32, #tpu.memory_space<vmem>>, vector<1x16xf32>
    %5 = vector.broadcast %4 : vector<1x16xf32> to vector<32x16xf32>
    %6 = arith.addf %3, %5 : vector<32x16xf32>
    %cst = arith.constant 0.000000e+00 : f32
    %7 = vector.broadcast %cst : f32 to vector<32x16xf32>
    %8 = arith.maximumf %6, %7 : vector<32x16xf32>
    %9 = arith.truncf %8 : vector<32x16xf32> to vector<32x16xbf16>
    %c0_5 = arith.constant 0 : index
    %c0_6 = arith.constant 0 : index
    %10 = vector.load %arg4[%c0_5, %c0_6] : memref<16x768xbf16, #tpu.memory_space<vmem>>, vector<16x768xbf16>
    %cst_7 = arith.constant dense<0.000000e+00> : vector<32x768xf32>
    %11 = tpu.matmul %9, %10, %cst_7 {dimension_numbers = #tpu.dot_dimension_numbers<[1], [0], [0], [1], [0, 0, 1, 1], [], []>} : vector<32x16xbf16>, vector<16x768xbf16>, vector<32x768xf32> -> vector<32x768xf32>
    %c0_8 = arith.constant 0 : index
    %c0_9 = arith.constant 0 : index
    %12 = vector.load %arg5[%c0_8, %c0_9] : memref<1x768xf32, #tpu.memory_space<vmem>>, vector<1x768xf32>
    %13 = vector.broadcast %12 : vector<1x768xf32> to vector<32x768xf32>
    %14 = arith.addf %11, %13 : vector<32x768xf32>
    %15 = arith.truncf %14 : vector<32x768xf32> to vector<32x768xbf16>
    %c0_10 = arith.constant 0 : index
    %c0_11 = arith.constant 0 : index
    %16 = vector.load %arg6[%c0_10, %c0_11] : memref<32x768xbf16, #tpu.memory_space<vmem>>, vector<32x768xbf16>
    tpu.vector_store %arg6[%c0_10, %c0_11], %15 {strides = array<i32>} : memref<32x768xbf16, #tpu.memory_space<vmem>>, vector<32x768xbf16>,
    return
  }
  func.func @transform_0(%arg0: i32) -> (i32, i32) {
    %c0_i32 = arith.constant 0 : i32
    %c0_i32_0 = arith.constant 0 : i32
    return %arg0, %c0_i32 : i32, i32
  }
  func.func @transform_1(%arg0: i32) -> (i32, i32) {
    %c0_i32 = arith.constant 0 : i32
    %c0_i32_0 = arith.constant 0 : i32
    %c0_i32_1 = arith.constant 0 : i32
    return %c0_i32, %c0_i32_0 : i32, i32
  }
  func.func @transform_2(%arg0: i32) -> (i32, i32) {
    %c0_i32 = arith.constant 0 : i32
    %c0_i32_0 = arith.constant 0 : i32
    %c0_i32_1 = arith.constant 0 : i32
    return %c0_i32, %c0_i32_0 : i32, i32
  }
  func.func @transform_3(%arg0: i32) -> (i32, i32) {
    %c0_i32 = arith.constant 0 : i32
    %c0_i32_0 = arith.constant 0 : i32
    %c0_i32_1 = arith.constant 0 : i32
    return %c0_i32, %c0_i32_0 : i32, i32
  }
  func.func @transform_4(%arg0: i32) -> (i32, i32) {
    %c0_i32 = arith.constant 0 : i32
    %c0_i32_0 = arith.constant 0 : i32
    %c0_i32_1 = arith.constant 0 : i32
    return %c0_i32, %c0_i32_0 : i32, i32
  }
  func.func @transform_5(%arg0: i32) -> (i32, i32) {
    %c0_i32 = arith.constant 0 : i32
    %c0_i32_0 = arith.constant 0 : i32
    return %arg0, %c0_i32 : i32, i32
  }
}

</mosaic_0001>

<bundles_post_ra>
// kernel: tpu_custom_call.1
= control target key start
LH: loop header
LB: loop body
LE: loop exit
PB: predicated region body
PF: predicated region fallthrough
CT: control target
= control target key end

     0   :  { %10 = vsyncpa [#allocation3], 0  ;;  %s1010_s0 = inlined_call_operand.vmem [shape: f32[64,16], index: 0, kind: input, shape index: {}]   ;;  %s1011_s1 = inlined_call_operand.vmem [shape: f32[1,16], index: 1, kind: input, shape index: {}]   ;;  %s1012_s2 = inlined_call_operand.vmem [shape: f32[1,16], index: 2, kind: input, shape index: {}]   ;;  %s1013_s3 = inlined_call_operand.vmem [shape: bf16[16,768], index: 3, kind: input, shape index: {}]   ;;  %s1014_s4 = inlined_call_operand.vmem [shape: f32[1,768], index: 4, kind: input, shape index: {}]   ;;  %s1015_s5 = inlined_call_operand.hbm [shape: bf16[64,768], index: 5, kind: output, shape index: {}]  }
   0x1   :  { %12 = vsyncpa [#allocation3 + $0x1], 0  ;;  %s856_s18 = smov 0   ;;  %s858_s19 = smov 0  }
   0x2   :  { %s860_s20 = smov 0   ;;  %s862_s21 = smov 0  }
   0x3 LB: > { %s877_s22 = sadd.s32 4294967295, %s820_s21   ;;  %s654_s23 = sadd.s32 4294967294, %s820_s21   ;;  %s820_s21 = sphi %s862_s21, %s1021_s21   ;;  %s816_s20 = sphi %s860_s20, %s1020_s20   ;;  %s812_s19 = sphi %s858_s19, %s1019_s19   ;;  %s808_s18 = sphi %s856_s18, %s1018_s18  }
   0x4   : > { %s881_s24 = sadd.s32 1, %s820_s21   ;;  %s135_s25 = sadd.s32 1, %s816_s20 }
   0x5   : > { %s132_s26 = ssub.s32 %s820_s21, %s881_s24  ;;  %p145_p0 = scmp.ne.s32.totalorder %s816_s20, %s812_s19 }
   0x6   : > { %p133_p1 = scmp.eq.s32.totalorder %s132_s26, 0  ;;  %p146_p2 = scmp.eq.s32.totalorder %s877_s22, 1 }
   0x7   : > { %p151_p3 = scmp.ne.s32.totalorder %s812_s19, %s808_s18  ;;  %p152_p4 = scmp.eq.s32.totalorder %s654_s23, 1 }
   0x8   : > { %s892_s27 = scalar_select %p133_p1, %s816_s20, %s135_s25  }
   0x9   : > { %p894_p5 = por %p146_p2, %p145_p0  ;;  %p898_p6 = por %p152_p4, %p151_p3 }
   0xa   : > { %p657_p7 = scmp.ge.s32.totalorder %s820_s21, 1  ;;  %p191_p8 = scmp.lt.s32.totalorder %s820_s21, 3 }
   0xc   : > { %p192_p9 = pnand %p657_p7, %p191_p8 }
   0xd   : > { %v749_v0 = vld [vmem:[%s1013_s3 + $0x4] ss:$24 sps:$4 sm:$0xff] (!%p192_p9)   ;;  %s658_s7 = sshll.u32 (!%p192_p9), %s877_s22, 2  ;;  %v751_v1 = vld [vmem:[%s1013_s3] ss:$24 sps:$4 sm:$0xff] (!%p192_p9)   ;;  %v822_v2 = vmov (!%p192_p9), 0   ;;  %v267_v27 = vlaneseq (!%p192_p9) }
   0xe   : > { %195 = sbr.rel (%p192_p9) target bundleno = 284 (0x11c), region = 40  ;;  %366 = vmatprep.mubr.bf16.mxu0 (!%p192_p9), %v822_v2  ;;  %376 = vmatprep.mubr.bf16.mxu1 (!%p192_p9), %v822_v2  ;;  %p220_p10 = scmp.lt.s32.totalorder (!%p192_p9), %s658_s7, 7  ;;  %v754_v3 = vld [vmem:[%s1013_s3 + $0xc] ss:$24 sps:$4 sm:$0xff] (!%p192_p9)   ;;  %v660_v5 = vld [vmem:[%s1011_s1] ss:$0 sm:$0xff] (!%p192_p9) }
   0xf   : > { %334 = vmatprep.subr.bf16.mxu0 (!%p192_p9), %v749_v0  ;;  %703 = vmatprep.subr.bf16.mxu1 (!%p192_p9), %v749_v0  ;;  %v757_v4 = vld [vmem:[%s1013_s3 + $0x14] ss:$24 sps:$4 sm:$0xff] (!%p192_p9)   ;;  %v661_v6 = vld [vmem:[%s1012_s2] ss:$0 sm:$0xff] (!%p192_p9)  ;;  %v755_v22 = vld [vmem:[%s1013_s3 + $0x10] ss:$24 sps:$4 sm:$0xff] (!%p192_p9)  }
  0x10   : > { %335 = vmatpush1.bf16.msra.mxu0 (!%p192_p9), %v751_v1  ;;  %704 = vmatpush1.bf16.msra.mxu1 (!%p192_p9), %v751_v1  ;;  %vm327_vm0 = vcmask (!%p192_p9), 130048   ;;  %v752_v24 = vld [vmem:[%s1013_s3 + $0x8] ss:$24 sps:$4 sm:$0xff] (!%p192_p9)   ;;  %v268_v28 = vshrl.u32 (!%p192_p9), %v267_v27, 7  ;;  %s216_s12 = sand.u32 (!%p192_p9), 1, %s812_s19   ;;  %s706_s15 = smul.u32 (!%p192_p9), 1536, %s877_s22 }
  0x11   : > { %387 = vmatprep.subr.bf16.mxu1 (!%p192_p9), %v754_v3  ;;  %440 = vmatprep.subr.bf16.mxu0 (!%p192_p9), %v757_v4  ;;  %v265_v30 = vld [vmem:[%s1014_s4] sm:$0x3f] (!%p192_p9)  ;;  %s705_s13 = smul.u32 (!%p192_p9), 96, %s216_s12  ;;  %s823_s30 = smov (!%p192_p9), [#allocation2]  }
  0x12   : > { %v269_v29 = vsub.s32 (!%p192_p9), 0, %v268_v28  ;;  %v273_v31 = vsub.s32 (!%p192_p9), 1, %v268_v28  ;;  %v285_v38 = vsub.s32 (!%p192_p9), 4, %v268_v28  ;;  %v277_v43 = vsub.s32 (!%p192_p9), 2, %v268_v28  ;;  %s960_s23 = scalar_lea.hbm (!%p192_p9), %s1015_s5, %s706_s15  ;;  %s762_s6 = sshll.u32 (!%p192_p9), %s823_s30, 4  ;;  %s763_s6 = int_to_ptr.vmem [resolvable:$false] %s762_s6 }
  0x13   : > { %v289_v44 = vsub.s32 (!%p192_p9), 5, %v268_v28  ;;  %v281_v49 = vsub.s32 (!%p192_p9), 3, %v268_v28 }
  0x14   : > { %v270_v32 = vrot.slane (!%p192_p9), %v265_v30, %v269_v29  ;;  %v274_v33 = vrot.slane (!%p192_p9), %v265_v30, %v273_v31  ;;  %v286_v56 = vrot.slane (!%p192_p9), %v265_v30, %v285_v38  ;;  %v278_v58 = vrot.slane (!%p192_p9), %v265_v30, %v277_v43 }
  0x15   : > { %s1023_s7 = smov (!%p220_p10, %s658_s7), 7  ;;  %v290_v59 = vrot.slane %v265_v30, %v289_v44  ;;  %v282_v61 = vrot.slane %v265_v30, %v281_v49 }
  0x16   : > { %s659_s14 = sshll.u32 %s1023_s7, 3  ;;  %s764_s7 = scalar_lea.vmem %s763_s6, 3072 }
  0x17   : > { %s223_s25 = scalar_lea.vmem %s1010_s0, %s659_s14  ;;  %s944_s14 = scalar_lea.vmem [#allocation2], %s705_s13 }
  0x18   : > { %v227_v7 = vld [vmem:[%s223_s25] sm:$0xff]  ;;  %v228_v8 = vld [vmem:[%s223_s25 + $0x8] sm:$0xff]  ;;  %v229_v9 = vld [vmem:[%s223_s25 + $0x10] sm:$0xff]  ;;  %s592_s16 = sshll.u32 %s944_s14, 4  ;;  %s962_s16 = int_to_ptr.vmem [resolvable:$true] %s592_s16 }
  0x19   : > { %v238_v10 = vmul.f32 %v660_v5, %v227_v7  ;;  %v239_v11 = vmul.f32 %v660_v5, %v228_v8  ;;  %v230_v12 = vld [vmem:[%s223_s25 + $0x18] sm:$0xff]  ;;  %v240_v13 = vmul.f32 %v660_v5, %v229_v9  ;;  %s969_s25 = scalar_lea.sflag [#allocation3], %s216_s12  ;;  %s758_s26 = scalar_lea.vmem %s962_s16, 1536 }
  0x1a   : > { %v241_v14 = vmul.f32 %v660_v5, %v230_v12  ;;  %p759_p11 = scmp.ne.s32.totalorder %s962_s16, %s758_s26  ;;  %p765_p0 = scmp.lt.s32.totalorder %s962_s16, %s763_s6 }
  0x1b   : > { %v249_v15 = vadd.f32 %v661_v6, %v238_v10  ;;  %v250_v16 = vadd.f32 %v661_v6, %v239_v11  ;;  %v251_v17 = vadd.f32 %v661_v6, %v240_v13  ;;  %p766_p1 = scmp.lt.s32.totalorder %s764_s7, %s758_s26 }
  0x1c   : > { %v252_v18 = vadd.f32 %v661_v6, %v241_v14  ;;  %p760_p12 = pnand %p759_p11, %p894_p5 }
  0x1d   : > { %v253_v19 = vmax.f32 %v249_v15, 0.0  ;;  %v254_v20 = vmax.f32 %v250_v16, 0.0  ;;  %v255_v21 = vmax.f32 %v251_v17, 0.0  ;;  %p767_p2 = por %p766_p1, %p765_p0 }
  0x1e   : > { %v256_v23 = vmax.f32 %v252_v18, 0.0  ;;  %p761_p13 = pneg %p760_p12 }
  0x1f   : > { %v257_v25 = vpack.c.bf16 %v254_v20, %v253_v19 }
  0x20   : > { %v258_v26 = vpack.c.bf16 %v256_v23, %v255_v21  ;;  %p768_p3 = pnand %p767_p2, %p761_p13 }
  0x21   : > { %668 = vmatmul.mubr.msk.bf16.vlgmr.msra.gmra.mrb[0].mxu0 %vm327_vm0, %v257_v25 }
  0x22   : > { %669 = vmatmul.mubr.msk.bf16.vlgmr.msra.gmra.mrb[0].mxu1 %vm327_vm0, %v258_v26  ;;  %441 = vmatpush1.bf16.msra.mxu0 %v755_v22 }
  0x23   : > { %388 = vmatpush1.bf16.msra.mxu1 %v752_v24  ;;  %419 = vmatprep.mubr.bf16.mxu1 %v822_v2 }
  0x24   : > { %472 = vmatprep.mubr.bf16.mxu0 %v822_v2 }
  0x29   : > { %672 = vmatmul.mubr.msk.bf16.vlgmr.msra.gmra.mrb[4].mxu0 %vm327_vm0, %v257_v25 }
  0x2a   : > { %670 = vmatmul.mubr.msk.bf16.vlgmr.msra.gmra.mrb[4].mxu1 %vm327_vm0, %v257_v25  ;;  %482 = vmatprep.mubr.bf16.mxu0 %v822_v2 }
  0x2b   : > { %429 = vmatprep.mubr.bf16.mxu1 %v822_v2 }
  0x31   : > { %673 = vmatmul.mubr.msk.bf16.gmra.mrb[8].mxu0 %vm327_vm0, %v258_v26 }
  0x32   : > { %671 = vmatmul.mubr.msk.bf16.gmra.mrb[8].mxu1 %vm327_vm0, %v258_v26 }
  0xf4   : > { %v368_v34 = vpop.f32.mrb[0].mxu0 }
  0xf5   : > { %v369_v35 = vadd.f32 %v368_v34, %v270_v32  ;;  %v378_v36 = vpop.f32.mrb[0].mxu1  ;;  %v370_v37 = vpop.f32.mrb[1].mxu0 }
  0xf6   : > { %v379_v39 = vadd.f32 %v378_v36, %v270_v32  ;;  %v371_v40 = vadd.f32 %v370_v37, %v274_v33  ;;  %v380_v41 = vpop.f32.mrb[1].mxu1  ;;  %v372_v42 = vpop.f32.mrb[2].mxu0 }
  0xf7   : > { %v381_v45 = vadd.f32 %v380_v41, %v274_v33  ;;  %v373_v46 = vadd.f32 %v372_v42, %v270_v32  ;;  %v382_v47 = vpop.f32.mrb[2].mxu1  ;;  %v374_v48 = vpop.f32.mrb[3].mxu0 }
  0xf8   : > { %v691_v50 = vpack.c.bf16 %v371_v40, %v369_v35  ;;  %v383_v51 = vadd.f32 %v382_v47, %v270_v32  ;;  %v375_v52 = vadd.f32 %v374_v48, %v274_v33  ;;  %v384_v53 = vpop.f32.mrb[3].mxu1 }
  0xf9   : > { %v697_v54 = vpack.c.bf16 %v381_v45, %v379_v39  ;;  %v385_v55 = vadd.f32 %v384_v53, %v274_v33 }
  0xfa   : > { %565 = vst [vmem:[%s944_s14] sm:$0xff] %v691_v50  ;;  %v694_v57 = vpack.c.bf16 %v375_v52, %v373_v46 }
  0xfb   : > { %571 = vst [vmem:[%s944_s14 + $0x30] sm:$0xff] %v697_v54  ;;  %v700_v60 = vpack.c.bf16 %v385_v55, %v383_v51 }
  0xfc   : > { %568 = vst [vmem:[%s944_s14 + $0x18] sm:$0xff] %v694_v57  ;;  %v474_v62 = vpop.f32.mrb[4].mxu0 }
  0xfd   : > { %574 = vst [vmem:[%s944_s14 + $0x48] sm:$0xff] %v700_v60  ;;  %v421_v63 = vpop.f32.mrb[4].mxu1  ;;  %v475_v0 = vadd.f32 %v474_v62, %v286_v56  ;;  %v476_v1 = vpop.f32.mrb[5].mxu0 }
  0xfe   : > { %v422_v2 = vadd.f32 %v421_v63, %v278_v58  ;;  %v423_v3 = vpop.f32.mrb[5].mxu1  ;;  %v477_v4 = vadd.f32 %v476_v1, %v290_v59  ;;  %v478_v5 = vpop.f32.mrb[6].mxu0 }
  0xff   : > { %v424_v6 = vadd.f32 %v423_v3, %v282_v61  ;;  %v425_v7 = vpop.f32.mrb[6].mxu1  ;;  %v479_v8 = vadd.f32 %v478_v5, %v286_v56  ;;  %v480_v9 = vpop.f32.mrb[7].mxu0 }
 0x100   : > { %v693_v10 = vpack.c.bf16 %v477_v4, %v475_v0  ;;  %v426_v11 = vadd.f32 %v425_v7, %v278_v58  ;;  %v427_v12 = vpop.f32.mrb[7].mxu1  ;;  %v481_v13 = vadd.f32 %v480_v9, %v290_v59 }
 0x101   : > { %v692_v14 = vpack.c.bf16 %v424_v6, %v422_v2  ;;  %v428_v15 = vadd.f32 %v427_v12, %v282_v61 }
 0x102   : > { %567 = vst [vmem:[%s944_s14 + $0x10] sm:$0xff] %v693_v10  ;;  %v696_v16 = vpack.c.bf16 %v481_v13, %v479_v8 }
 0x103   : > { %566 = vst [vmem:[%s944_s14 + $0x8] sm:$0xff] %v692_v14  ;;  %v695_v17 = vpack.c.bf16 %v428_v15, %v426_v11 }
 0x104   : > { %570 = vst [vmem:[%s944_s14 + $0x28] sm:$0xff] %v696_v16  ;;  %v484_v18 = vpop.f32.mrb[8].mxu0 }
 0x105   : > { %569 = vst [vmem:[%s944_s14 + $0x20] sm:$0xff] %v695_v17  ;;  %v431_v19 = vpop.f32.mrb[8].mxu1  ;;  %v485_v20 = vadd.f32 %v484_v18, %v286_v56  ;;  %v486_v21 = vpop.f32.mrb[9].mxu0 }
 0x106   : > { %v432_v22 = vadd.f32 %v431_v19, %v278_v58  ;;  %v433_v23 = vpop.f32.mrb[9].mxu1  ;;  %v487_v24 = vadd.f32 %v486_v21, %v290_v59  ;;  %v488_v25 = vpop.f32.mrb[10].mxu0 }
 0x107   : > { %v434_v26 = vadd.f32 %v433_v23, %v282_v61  ;;  %v435_v27 = vpop.f32.mrb[10].mxu1  ;;  %v489_v28 = vadd.f32 %v488_v25, %v286_v56  ;;  %v490_v29 = vpop.f32.mrb[11].mxu0 }
 0x108   : > { %v699_v30 = vpack.c.bf16 %v487_v24, %v485_v20  ;;  %v436_v31 = vadd.f32 %v435_v27, %v278_v58  ;;  %v437_v32 = vpop.f32.mrb[11].mxu1  ;;  %v491_v33 = vadd.f32 %v490_v29, %v290_v59 }
 0x109   : > { %v698_v34 = vpack.c.bf16 %v434_v26, %v432_v22  ;;  %v438_v35 = vadd.f32 %v437_v32, %v282_v61 }
 0x10a   : > { %573 = vst [vmem:[%s944_s14 + $0x40] sm:$0xff] %v699_v30  ;;  %v702_v36 = vpack.c.bf16 %v491_v33, %v489_v28 }
 0x10b   : > { %572 = vst [vmem:[%s944_s14 + $0x38] sm:$0xff] %v698_v34  ;;  %v701_v37 = vpack.c.bf16 %v438_v35, %v436_v31 }
 0x10c   : > { %576 = vst [vmem:[%s944_s14 + $0x58] sm:$0xff] %v702_v36 }
 0x10d   : > { %575 = vst [vmem:[%s944_s14 + $0x50] sm:$0xff] %v701_v37 }
 0x10e   : > { %771 = shalt.err (!%p768_p3)
}
 0x10f   : > { %s772_s8 = scalar_lea.hbm %s960_s23, 1536  ;;  %s776_s11 = scalar_lea.hbm %s1015_s5, 3072 }
 0x110   : > { %p773_p4 = scmp.ne.s32.totalorder %s960_s23, %s772_s8  ;;  %p777_p9 = scmp.lt.u32.totalorder %s960_s23, %s1015_s5 }
 0x111   : > { %p778_p10 = scmp.lt.u32.totalorder %s776_s11, %s772_s8  ;;  %p780_p12 = scmp.lt.u32.totalorder %s772_s8, %s960_s23 }
 0x112   : > { %p774_p7 = pnand %p773_p4, %p894_p5 }
 0x113   : > { %p779_p11 = por %p778_p10, %p777_p9 }
 0x114   : > { %p775_p8 = pneg %p774_p7 }
 0x115   : > { %p781_p13 = por %p780_p12, %p779_p11 }
 0x117   : > { %p782_p0 = pnand %p781_p13, %p775_p8 }
 0x119   : > { %785 = shalt.err (!%p782_p0)
}
 0x11a   : > { %s824_s14 = smov 384   ;;  %s825_s15 = smov 24  }
 0x11b   : > { %707 = dma.vmem_to_hbm [thread:$0]  (%p894_p5), %s962_s16, 1536, %s960_s23, %s969_s25, %s824_s14, %s824_s14, %s825_s15  }
 0x11c PF: > { %p713_p1 = scmp.ge.s32.totalorder %s820_s21, 2  ;;  %s607_s17 = sand.u32 1, %s808_s18  }
 0x11d   : > { %s608_s22 = scalar_lea.sflag [#allocation3], %s607_s17 }
 0x11e   : > { %p710_p2 = pnand %p713_p1, %p898_p6 }
 0x120   : > { %803 = dma.done.wait (!%p710_p2), %s608_s22, 1536  }
 0x121   : > { %805 = vsyncadd (!%p710_p2), %s608_s22, 4294965760  ;;  %p15_p3 = scmp.ge.s32.totalorder %s881_s24, 4   ;;  %s1018_s18 = smov %s812_s19 }
 0x122   : > { %s1019_s19 = smov %s816_s20  ;;  %s1020_s20 = smov %s892_s27 }
 0x123   : > { %s1021_s21 = smov %s881_s24  ;;  %17 = sbr.rel (!%p15_p3) target bundleno = 3 (0x3), region = 75 }
 0x12a   :  { %613 = vsyncpa [#allocation3], 1 }
 0x12b   :  { %615 = vsyncpa [#allocation3 + $0x1], 1 }

</bundles_post_ra>
